<compile_context>
chip_gen: v7x
topology: tpu7x:2x2x1
jax: 0.10.0
libtpu: 0.0.40
codegen_flags: <defaults>
</compile_context>

<pallas_src>
import functools

import numpy as np
import jax
import jax.numpy as jnp
from jax.experimental import pallas as pl
from jax.experimental.pallas import tpu as pltpu


# ----------------------------------------------------------------------------
# pltpu.roll convention probe (one tiny pallas_call, cached)
# ----------------------------------------------------------------------------
@functools.lru_cache(maxsize=1)
def _roll_is_jnp_convention() -> bool:
    """pltpu.roll is expected to match jnp.roll (a positive shift moves element
    i to index i+shift).  Probe it once on an 8x128 iota so the conv tap-shift
    sign used by the fused kernel is provably correct on any backend."""
    def probe(x_ref, o_ref):
        o_ref[...] = pltpu.roll(x_ref[...], 1, axis=0)

    x = jax.lax.broadcasted_iota(jnp.float32, (8, 128), 0)
    y = pl.pallas_call(
        probe, out_shape=jax.ShapeDtypeStruct((8, 128), jnp.float32))(x)
    return bool(y[1, 0] == 0.0)


# ----------------------------------------------------------------------------
# the fused kernel
# ----------------------------------------------------------------------------
def _fused_policy_kernel(*refs, n, H, W, layer_cfg, jnp_roll):
    """Whole PolicyNetwork forward in one kernel.

    refs (all VMEM whole-array blocks):
      [0] x0      (n*H*W, 1)  flattened conv input, rows ordered (image, h, w)
      [1] onehot  (n, A)      child_id -> action-slot scatter matrix
      [2] h       (1, E)      root embedding (psi input)
      [3 .. 3+2L) per conv layer: w (k*k, cin, cout), b (1, cout)
      then: psi_w1 (E, Hdn), psi_b1 (1, Hdn),
            psi_w2 (Hdn, A) *w_0, psi_b2 (1, A) *w_0,
            u_w (H*W, C_last) *w_1 (NCHW->NHWC permuted), u_b (1, 1) *w_1
      [-1] out    (1, A)
    """
    nconv = len(layer_cfg)
    out_ref = refs[-1]
    x0_ref, onehot_ref, h_ref = refs[0], refs[1], refs[2]
    conv_refs = refs[3:3 + 2 * nconv]
    pw1_ref, pb1_ref, pw2_ref, pb2_ref, uw_ref, ub_ref = refs[3 + 2 * nconv:-1]

    HW = H * W
    M = n * HW
    A = out_ref.shape[1]

    # ---- hoisted per-row (h, w) coordinates + edge masks for every off-centre
    #      tap used by any conv layer (computed once, reused by all layers).
    offsets = set()
    for kk, _, _ in layer_cfg:
        k = int(round(kk ** 0.5))
        r = k // 2
        for di in range(-r, r + 1):
            for dj in range(-r, r + 1):
                if (di, dj) != (0, 0):
                    offsets.add((di, dj))
    masks = {}
    if offsets:
        row = jax.lax.broadcasted_iota(jnp.int32, (M, 1), 0)
        hh = (row // W) % H
        ww = row % W
        for di, dj in sorted(offsets):
            valid = ((hh + di >= 0) & (hh + di < H) &
                     (ww + dj >= 0) & (ww + dj < W))
            masks[(di, dj)] = valid.astype(jnp.float32)          # (M, 1)

    def shift_rows(v, s):
        # vs[r] = v[(r + s) % M]; rows that wrapped are zeroed by the masks.
        if s == 0:
            return v
        amount = (-s) % M if jnp_roll else s % M
        return pltpu.roll(v, amount, axis=0)

    # ---- residual conv backbone: 'same' convs as accumulated shifted matmuls;
    #      activations never leave VMEM.
    x = x0_ref[...]                                              # (M, 1) f32
    res = None
    for idx, (kk, cin, cout) in enumerate(layer_cfg):
        w_ref = conv_refs[2 * idx]                               # (kk, cin, cout)
        b_ref = conv_refs[2 * idx + 1]                           # (1, cout)
        k = int(round(kk ** 0.5))
        if k == 1:                                               # 1x1 conv == matmul
            acc = jnp.dot(x, w_ref[0], preferred_element_type=jnp.float32)
        else:
            r = k // 2
            acc = None
            for di in range(-r, r + 1):
                for dj in range(-r, r + 1):
                    tap = (di + r) * k + (dj + r)
                    s = di * W + dj
                    # (optional, v5e/v6e): cast the dot operands to bfloat16
                    # here (keep f32 accumulation) to use the bf16 MXU path.
                    if cin == 1:
                        # (M,1)*(1,cout) outer product; the per-tap weight row
                        # is constant over rows, so the shift commutes with it.
                        t = shift_rows(x * w_ref[tap], s)
                    else:
                        t = jnp.dot(shift_rows(x, s), w_ref[tap],
                                    preferred_element_type=jnp.float32)
                    if (di, dj) != (0, 0):
                        t = t * masks[(di, dj)]
                    acc = t if acc is None else acc + t
        acc = acc + b_ref[...]                                   # bias, once per layer
        if idx % 4 == 2:                                         # residual add
            acc = acc + res
        x = jnp.maximum(acc, 0.0)                                # ReLU
        if idx % 4 == 0:                                         # residual snapshot
            res = x

    # ---- u head: per-image weighted reduction against the pre-permuted,
    #      pre-scaled u weight, scattered to child action slots via one-hot.
    uw = uw_ref[...]                                             # (HW, C_last) * w_1
    ub = ub_ref[...]                                             # (1, 1)       * w_1
    u_vec = jnp.zeros((1, A), jnp.float32)
    for i in range(n):
        yi = x[i * HW:(i + 1) * HW, :]                           # aligned static slice
        ui = jnp.sum(yi * uw, keepdims=True) + ub                # (1, 1)
        u_vec = u_vec + ui * onehot_ref[i:i + 1, :]

    # ---- psi MLP (Linear -> ReLU -> Linear); w_0 folded into pw2/pb2
    z = jnp.dot(h_ref[...], pw1_ref[...],
                preferred_element_type=jnp.float32) + pb1_ref[...]
    z = jnp.maximum(z, 0.0)
    psi = jnp.dot(z, pw2_ref[...],
                  preferred_element_type=jnp.float32) + pb2_ref[...]

    # ---- mix + softmax  (logits == w_0*psi + w_1*u, zeros for absent children,
    #      exactly as the PyTorch construction)
    logits = psi + u_vec
    m = jnp.max(logits, axis=-1, keepdims=True)
    e = jnp.exp(logits - m)
    denom = jnp.sum(e, axis=-1, keepdims=True)
    out_ref[...] = (e * pl.reciprocal(denom, approx=True)).astype(out_ref.dtype)


# ----------------------------------------------------------------------------
# wrapper
# ----------------------------------------------------------------------------
def policy_forward(params, h, h_primes, w_0=0.5, w_1=0.5):
    """h: (1, E); h_primes: list of (child_id, (1, E)).  As in the PyTorch
    module, batch==1 and 2*E must be a perfect square (E=128 -> 16x16 images)."""
    n = len(h_primes)
    child_ids = [int(cid) for cid, _ in h_primes]
    E = h.shape[1]
    H = W = int(round((2 * E) ** 0.5))
    HW = H * W
    a_dim = params["psi_w2"].shape[1]
    c_last = params["conv"][-1][0].shape[-1]

    # conv input: image i = reshape(concat(h, h'_i), (H, W)); flattened to rows
    # ordered (image, h, w), single input channel.
    hp = jnp.concatenate([p for _, p in h_primes], axis=0)             # (n, E)
    x0 = jnp.concatenate([jnp.broadcast_to(h, (n, E)), hp], axis=1)    # (n, 2E)
    x0 = x0.reshape(n * HW, 1).astype(jnp.float32)

    # static child_id -> action-slot scatter matrix (host-built constant)
    oh = np.zeros((n, a_dim), np.float32)
    for i, cid in enumerate(child_ids):
        oh[i, cid] = 1.0
    onehot = jnp.asarray(oh)

    # trace-time weight preprocessing:
    #  * permute the u weight from torch NCHW-flatten order to the kernel's NHWC
    #    row order (so the kernel never transposes activations), fold in w_1;
    #  * fold w_0 into the second psi linear.
    u_w_mat = params["u_w"].reshape(c_last, HW).T * w_1                # (HW, C_last)
    u_b = params["u_b"] * w_1                                          # (1, 1)
    psi_w2 = params["psi_w2"] * w_0
    psi_b2 = params["psi_b2"] * w_0

    layer_cfg = tuple(tuple(w.shape) for w, _ in params["conv"])       # (k*k, cin, cout)

    inputs = [x0, onehot, h.astype(jnp.float32)]
    for w, b in params["conv"]:
        inputs += [w, b]
    inputs += [params["psi_w1"], params["psi_b1"], psi_w2, psi_b2, u_w_mat, u_b]

    kernel = functools.partial(
        _fused_policy_kernel, n=n, H=H, W=W, layer_cfg=layer_cfg,
        jnp_roll=_roll_is_jnp_convention())

    # Single fused call, no grid: total weights + activations < 1 MiB, trivially
    # VMEM-resident on v5e/v6e/v7x (well under the 16-32 MiB default scoped VMEM).
    return pl.pallas_call(
        kernel,
        out_shape=jax.ShapeDtypeStruct((1, a_dim), jnp.float32),
    )(*inputs)


# ----------------------------------------------------------------------------
# pure-JAX reference (XLA), used only to validate the kernel in the demo
# ----------------------------------------------------------------------------
def policy_forward_reference(params, h, h_primes, w_0=0.5, w_1=0.5):
    with jax.default_matmul_precision("float32"):
        z = jnp.maximum(h @ params["psi_w1"] + params["psi_b1"], 0.0)
        psi = z @ params["psi_w2"] + params["psi_b2"]

        n = len(h_primes)
        E = h.shape[1]
        nd = int(round((2 * E) ** 0.5))
        imgs = [jnp.concatenate([h, hp], axis=1).reshape(nd, nd) for _, hp in h_primes]
        x = jnp.stack(imgs, axis=0)[..., None]                     # NHWC (n, H, W, 1)

        res = None
        for idx, (w, b) in enumerate(params["conv"]):
            kk, cin, cout = w.shape
            k = int(round(kk ** 0.5))
            pad = k // 2
            xp = jnp.pad(x, ((0, 0), (pad, pad), (pad, pad), (0, 0)))
            acc = jnp.zeros((n, nd, nd, cout), jnp.float32)
            for di in range(k):
                for dj in range(k):
                    acc = acc + jnp.einsum(
                        "nhwc,co->nhwo",
                        xp[:, di:di + nd, dj:dj + nd, :], w[di * k + dj])
            acc = acc + b.reshape(1, 1, 1, cout)
            if idx % 4 == 2:
                acc = acc + res
            x = jnp.maximum(acc, 0.0)
            if idx % 4 == 0:
                res = x

        flat = jnp.transpose(x, (0, 3, 1, 2)).reshape(n, -1)       # torch NCHW flatten
        u_x = flat @ params["u_w"] + params["u_b"]                 # (n, 1)

        a_dim = psi.shape[1]
        u = jnp.zeros((1, a_dim), jnp.float32)
        for i, (cid, _) in enumerate(h_primes):
            u = u.at[0, int(cid)].set(u_x[i, 0])
        return jax.nn.softmax(w_0 * psi + w_1 * u, axis=1)


# ----------------------------------------------------------------------------
# parameters
# ----------------------------------------------------------------------------
def init_params(key,
                action_dims=(3, 4, 6),
                n_residual_blocks=2,
                channel_sizes=(32, 32, 32, 16),
                kernels=(3, 3, 3, 1),
                embedding_size=128,
                hidden_size=128):
    io = [1] + list(channel_sizes) * n_residual_blocks
    ks = list(kernels) * n_residual_blocks
    conv = []
    for cin, cout, k in zip(io[:-1], io[1:], ks):
        key, k1, k2 = jax.random.split(key, 3)
        scale = 1.0 / float(k * k * cin) ** 0.5
        w = jax.random.normal(k1, (k * k, cin, cout), jnp.float32) * scale
        b = jax.random.normal(k2, (1, cout), jnp.float32) * 0.01
        conv.append((w, b))

    n_actions = int(np.prod(action_dims))
    u_in = 2 * embedding_size * channel_sizes[-1]

    key, k1, k2, k3, k4, k5, k6 = jax.random.split(key, 7)
    return {
        "conv": conv,
        "psi_w1": jax.random.normal(k1, (embedding_size, hidden_size), jnp.float32) / embedding_size ** 0.5,
        "psi_b1": jax.random.normal(k2, (1, hidden_size), jnp.float32) * 0.01,
        "psi_w2": jax.random.normal(k3, (hidden_size, n_actions), jnp.float32) / hidden_size ** 0.5,
        "psi_b2": jax.random.normal(k4, (1, n_actions), jnp.float32) * 0.01,
        "u_w": jax.random.normal(k5, (u_in, 1), jnp.float32) / u_in ** 0.5,
        "u_b": jax.random.normal(k6, (1, 1), jnp.float32) * 0.01,
    }


# ----------------------------------------------------------------------------
# demo
# ----------------------------------------------------------------------------
if __name__ == "__main__":
    key = jax.random.PRNGKey(0)
    key, pkey, hkey, p1, p2, p3 = jax.random.split(key, 6)

    params = init_params(pkey)

    embedding_size = 128
    h = jax.random.normal(hkey, (1, embedding_size), jnp.float32)
    h_primes = [
        (5, jax.random.normal(p1, (1, embedding_size), jnp.float32)),
        (20, jax.random.normal(p2, (1, embedding_size), jnp.float32)),
        (40, jax.random.normal(p3, (1, embedding_size), jnp.float32)),
    ]

    out = jax.block_until_ready(policy_forward(params, h, h_primes, w_0=0.5, w_1=0.5))
    ref = jax.block_until_ready(policy_forward_reference(params, h, h_primes, 0.5, 0.5))

    assert out.shape == (1, 72), out.shape
    assert bool(jnp.all(jnp.isfinite(out)))
    assert abs(float(jnp.sum(out)) - 1.0) < 1e-2          # softmax row sums to ~1
    np.testing.assert_allclose(np.asarray(out), np.asarray(ref), rtol=5e-2, atol=1e-3)
    print("KERNEL_OK")
</pallas_src>

<mosaic_0001>
module attributes {stable_mosaic.version = 11 : i64} {
  func.func @probe(%arg0: memref<8x128xf32, #tpu.memory_space<vmem>>, %arg1: memref<8x128xf32, #tpu.memory_space<vmem>>) attributes {dimension_semantics = [], scalar_prefetch = 0 : i64, scratch_operands = 0 : i64, tpu.core_type = #tpu.core_type<tc>} {
    %c0 = arith.constant 0 : index
    %c0_0 = arith.constant 0 : index
    %0 = vector.load %arg0[%c0, %c0_0] : memref<8x128xf32, #tpu.memory_space<vmem>>, vector<8x128xf32>
    %c1_i32 = arith.constant 1 : i32
    %1 = tpu.dynamic_rotate %0 by %c1_i32 dim 0 : vector<8x128xf32>, i32 -> vector<8x128xf32>
    %c0_1 = arith.constant 0 : index
    %c0_2 = arith.constant 0 : index
    %2 = vector.load %arg1[%c0_1, %c0_2] : memref<8x128xf32, #tpu.memory_space<vmem>>, vector<8x128xf32>
    tpu.vector_store %arg1[%c0_1, %c0_2], %1 {strides = array<i32>} : memref<8x128xf32, #tpu.memory_space<vmem>>, vector<8x128xf32>,
    return
  }
}

</mosaic_0001>

<bundles_post_ra>
// kernel: tpu_custom_call.1
= control target key start
LH: loop header
LB: loop body
LE: loop exit
PB: predicated region body
PF: predicated region fallthrough
CT: control target
= control target key end

     0   :  { %6 = vsyncpa [#allocation3], 0  ;;  %s125_s0 = inlined_call_operand.hbm [shape: f32[8,128], index: 0, kind: input, shape index: {}]   ;;  %s126_s1 = inlined_call_operand.hbm [shape: f32[8,128], index: 1, kind: output, shape index: {}]  }
   0x1   :  { %7 = vsyncpa [#allocation4], 0  ;;  %s89_s6 = smov [#allocation2]   ;;  %s41_s10 = scalar_lea.hbm %s125_s0, 128 }
   0x2   :  { %s14_s7 = sshll.u32 %s89_s6, 4  ;;  %p42_p0 = scmp.ne.s32.totalorder %s125_s0, %s41_s10  ;;  %s15_s7 = int_to_ptr.vmem [resolvable:$true] %s14_s7 }
   0x3   :  { %p45_p1 = scmp.lt.u32.totalorder %s41_s10, %s125_s0 }
   0x5   :  { %p47_p2 = pnand %p45_p1, %p42_p0 }
   0x7   :  { %50 = shalt.err (!%p47_p2)
}
   0x8   :  { %s51_s15 = scalar_lea.vmem %s15_s7, 128  ;;  %p56_p4 = scmp.lt.s32.totalorder %s15_s7, %s15_s7 }
   0x9   :  { %p52_p3 = scmp.ne.s32.totalorder %s15_s7, %s51_s15  ;;  %p57_p5 = scmp.lt.s32.totalorder %s51_s15, %s51_s15 }
   0xb   :  { %p58_p6 = por %p57_p5, %p56_p4 }
   0xd   :  { %p59_p7 = pnand %p58_p6, %p52_p3 }
   0xf   :  { %62 = shalt.err (!%p59_p7)
}
  0x10   :  { %17 = dma.hbm_to_vmem [thread:$0]  %s125_s0, 128, %s15_s7, [#allocation3]  }
  0x11   :  { %85 = dma.done.wait [#allocation3], 128  }
  0x12   :  { %86 = vsyncadd [#allocation3], 4294967168  ;;  %s90_s18 = smov [#allocation5]   ;;  %v21_v0 = vld [vmem:[#allocation2] sm:$0xff] }
  0x13   :  { %s30_s19 = sshll.u32 %s90_s18, 4  ;;  %v22_v1 = vrot.slane %v21_v0, 7  ;;  %s31_s19 = int_to_ptr.vmem [resolvable:$true] %s30_s19 }
  0x14   :  { %s63_s20 = scalar_lea.vmem %s31_s19, 128  ;;  %p68_p9 = scmp.lt.s32.totalorder %s31_s19, %s31_s19 }
  0x15   :  { %23 = vst [vmem:[#allocation5] sm:$0xff] %v22_v1  ;;  %p64_p8 = scmp.ne.s32.totalorder %s31_s19, %s63_s20  ;;  %p69_p10 = scmp.lt.s32.totalorder %s63_s20, %s63_s20 }
  0x17   :  { %p70_p11 = por %p69_p10, %p68_p9 }
  0x19   :  { %p71_p12 = pnand %p70_p11, %p64_p8 }
  0x1b   :  { %74 = shalt.err (!%p71_p12)
}
  0x1c   :  { %s75_s23 = scalar_lea.hbm %s126_s1, 128 }
  0x1d   :  { %p76_p13 = scmp.ne.s32.totalorder %s126_s1, %s75_s23  ;;  %p79_p0 = scmp.lt.u32.totalorder %s75_s23, %s126_s1 }
  0x1f   :  { %p81_p1 = pnand %p79_p0, %p76_p13 }
  0x21   :  { %84 = shalt.err (!%p81_p1)
}
  0x22   :  { %33 = dma.vmem_to_hbm [thread:$0]  %s31_s19, 128, %s126_s1, [#allocation4]  }
  0x23   :  { %87 = dma.done.wait [#allocation4], 128  }
  0x24   :  { %88 = vsyncadd [#allocation4], 4294967168 }
  0x25   :  { %37 = vsyncpa [#allocation3], 1 }
  0x26   :  { %38 = vsyncpa [#allocation4], 1 }

</bundles_post_ra>
